<compile_context>
chip_gen: v5e
topology: v5e:2x2
jax: 0.10.0
libtpu: 0.0.40
codegen_flags: <defaults>
</compile_context>

<pallas_src>
import functools

import jax
import jax.numpy as jnp
from jax.experimental import pallas as pl
from jax.experimental.pallas import tpu as pltpu


def _affine_lanes(w, b, x):
    """y = w @ x + b with the batch on lanes, as unrolled VPU broadcast-FMA.

    w: [out, in]   (PyTorch nn.Linear weight layout)
    b: [out, 1]
    x: [in, TB]    (features on sublanes, batch on lanes)
    returns [out, TB]
    """
    acc = w[:, 0:1] * x[0:1, :]
    for k in range(1, w.shape[1]):           # static unroll over tiny K (8/16/8)
        acc = acc + w[:, k:k + 1] * x[k:k + 1, :]
    return acc + b


def dqn_kernel(x_ref, w1_ref, b1_ref, w2_ref, b2_ref, w3_ref, b3_ref, o_ref):
    x = x_ref[...]                                                  # [S, TB]
    h1 = jnp.maximum(_affine_lanes(w1_ref[...], b1_ref[...], x), 0.0)   # [fc1, TB]
    h2 = jnp.maximum(_affine_lanes(w2_ref[...], b2_ref[...], h1), 0.0)  # [fc2, TB]
    o_ref[...] = _affine_lanes(w3_ref[...], b3_ref[...], h2)            # [A, TB]


def dqn_forward_t(x_t, params, *, tb=512):
    """Feature-major forward: x_t [state_size, Bp] -> Q [action_size, Bp].

    Bp must be a multiple of tb (tb a multiple of 128 so tiles are lane-dense).
    """
    w1, b1, w2, b2, w3, b3 = (params[k] for k in ("w1", "b1", "w2", "b2", "w3", "b3"))
    S, Bp = x_t.shape
    A = w3.shape[0]
    assert Bp % tb == 0 and tb % 128 == 0

    const = lambda a: pl.BlockSpec(a.shape, lambda i: (0,) * a.ndim)  # VMEM-resident
    return pl.pallas_call(
        dqn_kernel,
        out_shape=jax.ShapeDtypeStruct((A, Bp), jnp.float32),
        grid=(Bp // tb,),
        in_specs=[
            pl.BlockSpec((S, tb), lambda i: (0, i)),   # stream x tiles over the batch
            const(w1), const(b1), const(w2), const(b2), const(w3), const(b3),
        ],
        out_specs=pl.BlockSpec((A, tb), lambda i: (0, i)),
        compiler_params=pltpu.CompilerParams(
            dimension_semantics=("parallel",),          # v7x: split batch across TCs
        ),
    )(x_t, w1, b1, w2, b2, w3, b3)


@functools.partial(jax.jit, static_argnames=("tb",))
def dqn_forward(x, params, *, tb=512):
    """PyTorch-compatible forward: x [B, state_size] -> Q-values [B, action_size]."""
    B, S = x.shape
    Bp = max(tb, pl.cdiv(B, tb) * tb)                   # pad batch to a tile multiple
    x_t = jnp.pad(x.astype(jnp.float32).T, ((0, 0), (0, Bp - B)))   # [S, Bp], batch on lanes
    q_t = dqn_forward_t(x_t, params, tb=tb)             # [A, Bp]
    return q_t[:, :B].T                                 # back to [B, A]


def init_dqn_params(key, state_size, action_size, fc1_unit=16, fc2_unit=8):
    """nn.Linear-style init (uniform +/- 1/sqrt(fan_in)); PyTorch [out, in] layout."""
    ks = jax.random.split(key, 6)

    def linear(kw, kb, fan_in, fan_out):
        bound = 1.0 / float(fan_in) ** 0.5
        w = jax.random.uniform(kw, (fan_out, fan_in), jnp.float32, -bound, bound)
        b = jax.random.uniform(kb, (fan_out, 1), jnp.float32, -bound, bound)
        return w, b

    w1, b1 = linear(ks[0], ks[1], state_size, fc1_unit)
    w2, b2 = linear(ks[2], ks[3], fc1_unit, fc2_unit)
    w3, b3 = linear(ks[4], ks[5], fc2_unit, action_size)
    return {"w1": w1, "b1": b1, "w2": w2, "b2": b2, "w3": w3, "b3": b3}


def dqn_reference(x, params):
    h1 = jnp.maximum(x @ params["w1"].T + params["b1"].T, 0.0)
    h2 = jnp.maximum(h1 @ params["w2"].T + params["b2"].T, 0.0)
    return h2 @ params["w3"].T + params["b3"].T


if __name__ == "__main__":
    key = jax.random.PRNGKey(0)
    state_size, action_size = 8, 4

    k_param, k_small, k_big = jax.random.split(key, 3)
    params = init_dqn_params(k_param, state_size, action_size, fc1_unit=16, fc2_unit=8)

    # Small batch (module-spec-sized) correctness check.
    x_small = jax.random.normal(k_small, (2, state_size), jnp.float32)
    out_small = jax.block_until_ready(dqn_forward(x_small, params))
    assert out_small.shape == (2, action_size)
    assert jnp.allclose(out_small, dqn_reference(x_small, params), atol=1e-5, rtol=1e-5)

    # Larger batch exercising the streaming grid (3 tiles of 512 lanes).
    x_big = jax.random.normal(k_big, (1536, state_size), jnp.float32)
    out_big = jax.block_until_ready(dqn_forward(x_big, params))
    assert out_big.shape == (1536, action_size)
    assert jnp.allclose(out_big, dqn_reference(x_big, params), atol=1e-5, rtol=1e-5)

    print("KERNEL_OK")
</pallas_src>

<mosaic_0001>
module attributes {stable_mosaic.version = 11 : i64} {
  func.func @dqn_kernel(%arg0: i32, %arg1: memref<8x512xf32, #tpu.memory_space<vmem>>, %arg2: memref<16x8xf32, #tpu.memory_space<vmem>>, %arg3: memref<16x1xf32, #tpu.memory_space<vmem>>, %arg4: memref<8x16xf32, #tpu.memory_space<vmem>>, %arg5: memref<8x1xf32, #tpu.memory_space<vmem>>, %arg6: memref<4x8xf32, #tpu.memory_space<vmem>>, %arg7: memref<4x1xf32, #tpu.memory_space<vmem>>, %arg8: memref<4x512xf32, #tpu.memory_space<vmem>>) attributes {dimension_semantics = [#tpu.dimension_semantics<parallel>], iteration_bounds = array<i64: 1>, scalar_prefetch = 0 : i64, scratch_operands = 0 : i64, tpu.core_type = #tpu.core_type<tc>, window_params = [{transform_indices = @transform_0, window_bounds = array<i64: 8, 512>}, {pipeline_mode = #tpu.pipeline_mode<synchronous>, transform_indices = @transform_1, window_bounds = array<i64: 16, 8>}, {pipeline_mode = #tpu.pipeline_mode<synchronous>, transform_indices = @transform_2, window_bounds = array<i64: 16, 1>}, {pipeline_mode = #tpu.pipeline_mode<synchronous>, transform_indices = @transform_3, window_bounds = array<i64: 8, 16>}, {pipeline_mode = #tpu.pipeline_mode<synchronous>, transform_indices = @transform_4, window_bounds = array<i64: 8, 1>}, {pipeline_mode = #tpu.pipeline_mode<synchronous>, transform_indices = @transform_5, window_bounds = array<i64: 4, 8>}, {pipeline_mode = #tpu.pipeline_mode<synchronous>, transform_indices = @transform_6, window_bounds = array<i64: 4, 1>}, {transform_indices = @transform_7, window_bounds = array<i64: 4, 512>}]} {
    %c0 = arith.constant 0 : index
    %c0_0 = arith.constant 0 : index
    %0 = vector.load %arg1[%c0, %c0_0] : memref<8x512xf32, #tpu.memory_space<vmem>>, vector<8x512xf32>
    %c0_1 = arith.constant 0 : index
    %c0_2 = arith.constant 0 : index
    %1 = vector.load %arg2[%c0_1, %c0_2] : memref<16x8xf32, #tpu.memory_space<vmem>>, vector<16x8xf32>
    %c0_3 = arith.constant 0 : index
    %c0_4 = arith.constant 0 : index
    %2 = vector.load %arg3[%c0_3, %c0_4] : memref<16x1xf32, #tpu.memory_space<vmem>>, vector<16x1xf32>
    %3 = vector.extract_strided_slice %1 {offsets = [0, 0], sizes = [16, 1], strides = [1, 1]} : vector<16x8xf32> to vector<16x1xf32>
    %4 = vector.extract_strided_slice %0 {offsets = [0, 0], sizes = [1, 512], strides = [1, 1]} : vector<8x512xf32> to vector<1x512xf32>
    %5 = vector.broadcast %3 : vector<16x1xf32> to vector<16x512xf32>
    %6 = vector.broadcast %4 : vector<1x512xf32> to vector<16x512xf32>
    %7 = arith.mulf %5, %6 : vector<16x512xf32>
    %8 = vector.extract_strided_slice %1 {offsets = [0, 1], sizes = [16, 1], strides = [1, 1]} : vector<16x8xf32> to vector<16x1xf32>
    %9 = vector.extract_strided_slice %0 {offsets = [1, 0], sizes = [1, 512], strides = [1, 1]} : vector<8x512xf32> to vector<1x512xf32>
    %10 = vector.broadcast %8 : vector<16x1xf32> to vector<16x512xf32>
    %11 = vector.broadcast %9 : vector<1x512xf32> to vector<16x512xf32>
    %12 = arith.mulf %10, %11 : vector<16x512xf32>
    %13 = arith.addf %7, %12 : vector<16x512xf32>
    %14 = vector.extract_strided_slice %1 {offsets = [0, 2], sizes = [16, 1], strides = [1, 1]} : vector<16x8xf32> to vector<16x1xf32>
    %15 = vector.extract_strided_slice %0 {offsets = [2, 0], sizes = [1, 512], strides = [1, 1]} : vector<8x512xf32> to vector<1x512xf32>
    %16 = vector.broadcast %14 : vector<16x1xf32> to vector<16x512xf32>
    %17 = vector.broadcast %15 : vector<1x512xf32> to vector<16x512xf32>
    %18 = arith.mulf %16, %17 : vector<16x512xf32>
    %19 = arith.addf %13, %18 : vector<16x512xf32>
    %20 = vector.extract_strided_slice %1 {offsets = [0, 3], sizes = [16, 1], strides = [1, 1]} : vector<16x8xf32> to vector<16x1xf32>
    %21 = vector.extract_strided_slice %0 {offsets = [3, 0], sizes = [1, 512], strides = [1, 1]} : vector<8x512xf32> to vector<1x512xf32>
    %22 = vector.broadcast %20 : vector<16x1xf32> to vector<16x512xf32>
    %23 = vector.broadcast %21 : vector<1x512xf32> to vector<16x512xf32>
    %24 = arith.mulf %22, %23 : vector<16x512xf32>
    %25 = arith.addf %19, %24 : vector<16x512xf32>
    %26 = vector.extract_strided_slice %1 {offsets = [0, 4], sizes = [16, 1], strides = [1, 1]} : vector<16x8xf32> to vector<16x1xf32>
    %27 = vector.extract_strided_slice %0 {offsets = [4, 0], sizes = [1, 512], strides = [1, 1]} : vector<8x512xf32> to vector<1x512xf32>
    %28 = vector.broadcast %26 : vector<16x1xf32> to vector<16x512xf32>
    %29 = vector.broadcast %27 : vector<1x512xf32> to vector<16x512xf32>
    %30 = arith.mulf %28, %29 : vector<16x512xf32>
    %31 = arith.addf %25, %30 : vector<16x512xf32>
    %32 = vector.extract_strided_slice %1 {offsets = [0, 5], sizes = [16, 1], strides = [1, 1]} : vector<16x8xf32> to vector<16x1xf32>
    %33 = vector.extract_strided_slice %0 {offsets = [5, 0], sizes = [1, 512], strides = [1, 1]} : vector<8x512xf32> to vector<1x512xf32>
    %34 = vector.broadcast %32 : vector<16x1xf32> to vector<16x512xf32>
    %35 = vector.broadcast %33 : vector<1x512xf32> to vector<16x512xf32>
    %36 = arith.mulf %34, %35 : vector<16x512xf32>
    %37 = arith.addf %31, %36 : vector<16x512xf32>
    %38 = vector.extract_strided_slice %1 {offsets = [0, 6], sizes = [16, 1], strides = [1, 1]} : vector<16x8xf32> to vector<16x1xf32>
    %39 = vector.extract_strided_slice %0 {offsets = [6, 0], sizes = [1, 512], strides = [1, 1]} : vector<8x512xf32> to vector<1x512xf32>
    %40 = vector.broadcast %38 : vector<16x1xf32> to vector<16x512xf32>
    %41 = vector.broadcast %39 : vector<1x512xf32> to vector<16x512xf32>
    %42 = arith.mulf %40, %41 : vector<16x512xf32>
    %43 = arith.addf %37, %42 : vector<16x512xf32>
    %44 = vector.extract_strided_slice %1 {offsets = [0, 7], sizes = [16, 1], strides = [1, 1]} : vector<16x8xf32> to vector<16x1xf32>
    %45 = vector.extract_strided_slice %0 {offsets = [7, 0], sizes = [1, 512], strides = [1, 1]} : vector<8x512xf32> to vector<1x512xf32>
    %46 = vector.broadcast %44 : vector<16x1xf32> to vector<16x512xf32>
    %47 = vector.broadcast %45 : vector<1x512xf32> to vector<16x512xf32>
    %48 = arith.mulf %46, %47 : vector<16x512xf32>
    %49 = arith.addf %43, %48 : vector<16x512xf32>
    %50 = vector.broadcast %2 : vector<16x1xf32> to vector<16x512xf32>
    %51 = arith.addf %49, %50 : vector<16x512xf32>
    %cst = arith.constant 0.000000e+00 : f32
    %52 = vector.broadcast %cst : f32 to vector<16x512xf32>
    %53 = arith.maximumf %51, %52 : vector<16x512xf32>
    %c0_5 = arith.constant 0 : index
    %c0_6 = arith.constant 0 : index
    %54 = vector.load %arg4[%c0_5, %c0_6] : memref<8x16xf32, #tpu.memory_space<vmem>>, vector<8x16xf32>
    %c0_7 = arith.constant 0 : index
    %c0_8 = arith.constant 0 : index
    %55 = vector.load %arg5[%c0_7, %c0_8] : memref<8x1xf32, #tpu.memory_space<vmem>>, vector<8x1xf32>
    %56 = vector.extract_strided_slice %54 {offsets = [0, 0], sizes = [8, 1], strides = [1, 1]} : vector<8x16xf32> to vector<8x1xf32>
    %57 = vector.extract_strided_slice %53 {offsets = [0, 0], sizes = [1, 512], strides = [1, 1]} : vector<16x512xf32> to vector<1x512xf32>
    %58 = vector.broadcast %56 : vector<8x1xf32> to vector<8x512xf32>
    %59 = vector.broadcast %57 : vector<1x512xf32> to vector<8x512xf32>
    %60 = arith.mulf %58, %59 : vector<8x512xf32>
    %61 = vector.extract_strided_slice %54 {offsets = [0, 1], sizes = [8, 1], strides = [1, 1]} : vector<8x16xf32> to vector<8x1xf32>
    %62 = vector.extract_strided_slice %53 {offsets = [1, 0], sizes = [1, 512], strides = [1, 1]} : vector<16x512xf32> to vector<1x512xf32>
    %63 = vector.broadcast %61 : vector<8x1xf32> to vector<8x512xf32>
    %64 = vector.broadcast %62 : vector<1x512xf32> to vector<8x512xf32>
    %65 = arith.mulf %63, %64 : vector<8x512xf32>
    %66 = arith.addf %60, %65 : vector<8x512xf32>
    %67 = vector.extract_strided_slice %54 {offsets = [0, 2], sizes = [8, 1], strides = [1, 1]} : vector<8x16xf32> to vector<8x1xf32>
    %68 = vector.extract_strided_slice %53 {offsets = [2, 0], sizes = [1, 512], strides = [1, 1]} : vector<16x512xf32> to vector<1x512xf32>
    %69 = vector.broadcast %67 : vector<8x1xf32> to vector<8x512xf32>
    %70 = vector.broadcast %68 : vector<1x512xf32> to vector<8x512xf32>
    %71 = arith.mulf %69, %70 : vector<8x512xf32>
    %72 = arith.addf %66, %71 : vector<8x512xf32>
    %73 = vector.extract_strided_slice %54 {offsets = [0, 3], sizes = [8, 1], strides = [1, 1]} : vector<8x16xf32> to vector<8x1xf32>
    %74 = vector.extract_strided_slice %53 {offsets = [3, 0], sizes = [1, 512], strides = [1, 1]} : vector<16x512xf32> to vector<1x512xf32>
    %75 = vector.broadcast %73 : vector<8x1xf32> to vector<8x512xf32>
    %76 = vector.broadcast %74 : vector<1x512xf32> to vector<8x512xf32>
    %77 = arith.mulf %75, %76 : vector<8x512xf32>
    %78 = arith.addf %72, %77 : vector<8x512xf32>
    %79 = vector.extract_strided_slice %54 {offsets = [0, 4], sizes = [8, 1], strides = [1, 1]} : vector<8x16xf32> to vector<8x1xf32>
    %80 = vector.extract_strided_slice %53 {offsets = [4, 0], sizes = [1, 512], strides = [1, 1]} : vector<16x512xf32> to vector<1x512xf32>
    %81 = vector.broadcast %79 : vector<8x1xf32> to vector<8x512xf32>
    %82 = vector.broadcast %80 : vector<1x512xf32> to vector<8x512xf32>
    %83 = arith.mulf %81, %82 : vector<8x512xf32>
    %84 = arith.addf %78, %83 : vector<8x512xf32>
    %85 = vector.extract_strided_slice %54 {offsets = [0, 5], sizes = [8, 1], strides = [1, 1]} : vector<8x16xf32> to vector<8x1xf32>
    %86 = vector.extract_strided_slice %53 {offsets = [5, 0], sizes = [1, 512], strides = [1, 1]} : vector<16x512xf32> to vector<1x512xf32>
    %87 = vector.broadcast %85 : vector<8x1xf32> to vector<8x512xf32>
    %88 = vector.broadcast %86 : vector<1x512xf32> to vector<8x512xf32>
    %89 = arith.mulf %87, %88 : vector<8x512xf32>
    %90 = arith.addf %84, %89 : vector<8x512xf32>
    %91 = vector.extract_strided_slice %54 {offsets = [0, 6], sizes = [8, 1], strides = [1, 1]} : vector<8x16xf32> to vector<8x1xf32>
    %92 = vector.extract_strided_slice %53 {offsets = [6, 0], sizes = [1, 512], strides = [1, 1]} : vector<16x512xf32> to vector<1x512xf32>
    %93 = vector.broadcast %91 : vector<8x1xf32> to vector<8x512xf32>
    %94 = vector.broadcast %92 : vector<1x512xf32> to vector<8x512xf32>
    %95 = arith.mulf %93, %94 : vector<8x512xf32>
    %96 = arith.addf %90, %95 : vector<8x512xf32>
    %97 = vector.extract_strided_slice %54 {offsets = [0, 7], sizes = [8, 1], strides = [1, 1]} : vector<8x16xf32> to vector<8x1xf32>
    %98 = vector.extract_strided_slice %53 {offsets = [7, 0], sizes = [1, 512], strides = [1, 1]} : vector<16x512xf32> to vector<1x512xf32>
    %99 = vector.broadcast %97 : vector<8x1xf32> to vector<8x512xf32>
    %100 = vector.broadcast %98 : vector<1x512xf32> to vector<8x512xf32>
    %101 = arith.mulf %99, %100 : vector<8x512xf32>
    %102 = arith.addf %96, %101 : vector<8x512xf32>
    %103 = vector.extract_strided_slice %54 {offsets = [0, 8], sizes = [8, 1], strides = [1, 1]} : vector<8x16xf32> to vector<8x1xf32>
    %104 = vector.extract_strided_slice %53 {offsets = [8, 0], sizes = [1, 512], strides = [1, 1]} : vector<16x512xf32> to vector<1x512xf32>
    %105 = vector.broadcast %103 : vector<8x1xf32> to vector<8x512xf32>
    %106 = vector.broadcast %104 : vector<1x512xf32> to vector<8x512xf32>
    %107 = arith.mulf %105, %106 : vector<8x512xf32>
    %108 = arith.addf %102, %107 : vector<8x512xf32>
    %109 = vector.extract_strided_slice %54 {offsets = [0, 9], sizes = [8, 1], strides = [1, 1]} : vector<8x16xf32> to vector<8x1xf32>
    %110 = vector.extract_strided_slice %53 {offsets = [9, 0], sizes = [1, 512], strides = [1, 1]} : vector<16x512xf32> to vector<1x512xf32>
    %111 = vector.broadcast %109 : vector<8x1xf32> to vector<8x512xf32>
    %112 = vector.broadcast %110 : vector<1x512xf32> to vector<8x512xf32>
    %113 = arith.mulf %111, %112 : vector<8x512xf32>
    %114 = arith.addf %108, %113 : vector<8x512xf32>
    %115 = vector.extract_strided_slice %54 {offsets = [0, 10], sizes = [8, 1], strides = [1, 1]} : vector<8x16xf32> to vector<8x1xf32>
    %116 = vector.extract_strided_slice %53 {offsets = [10, 0], sizes = [1, 512], strides = [1, 1]} : vector<16x512xf32> to vector<1x512xf32>
    %117 = vector.broadcast %115 : vector<8x1xf32> to vector<8x512xf32>
    %118 = vector.broadcast %116 : vector<1x512xf32> to vector<8x512xf32>
    %119 = arith.mulf %117, %118 : vector<8x512xf32>
    %120 = arith.addf %114, %119 : vector<8x512xf32>
    %121 = vector.extract_strided_slice %54 {offsets = [0, 11], sizes = [8, 1], strides = [1, 1]} : vector<8x16xf32> to vector<8x1xf32>
    %122 = vector.extract_strided_slice %53 {offsets = [11, 0], sizes = [1, 512], strides = [1, 1]} : vector<16x512xf32> to vector<1x512xf32>
    %123 = vector.broadcast %121 : vector<8x1xf32> to vector<8x512xf32>
    %124 = vector.broadcast %122 : vector<1x512xf32> to vector<8x512xf32>
    %125 = arith.mulf %123, %124 : vector<8x512xf32>
    %126 = arith.addf %120, %125 : vector<8x512xf32>
    %127 = vector.extract_strided_slice %54 {offsets = [0, 12], sizes = [8, 1], strides = [1, 1]} : vector<8x16xf32> to vector<8x1xf32>
    %128 = vector.extract_strided_slice %53 {offsets = [12, 0], sizes = [1, 512], strides = [1, 1]} : vector<16x512xf32> to vector<1x512xf32>
    %129 = vector.broadcast %127 : vector<8x1xf32> to vector<8x512xf32>
    %130 = vector.broadcast %128 : vector<1x512xf32> to vector<8x512xf32>
    %131 = arith.mulf %129, %130 : vector<8x512xf32>
    %132 = arith.addf %126, %131 : vector<8x512xf32>
    %133 = vector.extract_strided_slice %54 {offsets = [0, 13], sizes = [8, 1], strides = [1, 1]} : vector<8x16xf32> to vector<8x1xf32>
    %134 = vector.extract_strided_slice %53 {offsets = [13, 0], sizes = [1, 512], strides = [1, 1]} : vector<16x512xf32> to vector<1x512xf32>
    %135 = vector.broadcast %133 : vector<8x1xf32> to vector<8x512xf32>
    %136 = vector.broadcast %134 : vector<1x512xf32> to vector<8x512xf32>
    %137 = arith.mulf %135, %136 : vector<8x512xf32>
    %138 = arith.addf %132, %137 : vector<8x512xf32>
    %139 = vector.extract_strided_slice %54 {offsets = [0, 14], sizes = [8, 1], strides = [1, 1]} : vector<8x16xf32> to vector<8x1xf32>
    %140 = vector.extract_strided_slice %53 {offsets = [14, 0], sizes = [1, 512], strides = [1, 1]} : vector<16x512xf32> to vector<1x512xf32>
    %141 = vector.broadcast %139 : vector<8x1xf32> to vector<8x512xf32>
    %142 = vector.broadcast %140 : vector<1x512xf32> to vector<8x512xf32>
    %143 = arith.mulf %141, %142 : vector<8x512xf32>
    %144 = arith.addf %138, %143 : vector<8x512xf32>
    %145 = vector.extract_strided_slice %54 {offsets = [0, 15], sizes = [8, 1], strides = [1, 1]} : vector<8x16xf32> to vector<8x1xf32>
    %146 = vector.extract_strided_slice %53 {offsets = [15, 0], sizes = [1, 512], strides = [1, 1]} : vector<16x512xf32> to vector<1x512xf32>
    %147 = vector.broadcast %145 : vector<8x1xf32> to vector<8x512xf32>
    %148 = vector.broadcast %146 : vector<1x512xf32> to vector<8x512xf32>
    %149 = arith.mulf %147, %148 : vector<8x512xf32>
    %150 = arith.addf %144, %149 : vector<8x512xf32>
    %151 = vector.broadcast %55 : vector<8x1xf32> to vector<8x512xf32>
    %152 = arith.addf %150, %151 : vector<8x512xf32>
    %cst_9 = arith.constant 0.000000e+00 : f32
    %153 = vector.broadcast %cst_9 : f32 to vector<8x512xf32>
    %154 = arith.maximumf %152, %153 : vector<8x512xf32>
    %c0_10 = arith.constant 0 : index
    %c0_11 = arith.constant 0 : index
    %155 = vector.load %arg6[%c0_10, %c0_11] : memref<4x8xf32, #tpu.memory_space<vmem>>, vector<4x8xf32>
    %c0_12 = arith.constant 0 : index
    %c0_13 = arith.constant 0 : index
    %156 = vector.load %arg7[%c0_12, %c0_13] : memref<4x1xf32, #tpu.memory_space<vmem>>, vector<4x1xf32>
    %157 = vector.extract_strided_slice %155 {offsets = [0, 0], sizes = [4, 1], strides = [1, 1]} : vector<4x8xf32> to vector<4x1xf32>
    %158 = vector.extract_strided_slice %154 {offsets = [0, 0], sizes = [1, 512], strides = [1, 1]} : vector<8x512xf32> to vector<1x512xf32>
    %159 = vector.broadcast %157 : vector<4x1xf32> to vector<4x512xf32>
    %160 = vector.broadcast %158 : vector<1x512xf32> to vector<4x512xf32>
    %161 = arith.mulf %159, %160 : vector<4x512xf32>
    %162 = vector.extract_strided_slice %155 {offsets = [0, 1], sizes = [4, 1], strides = [1, 1]} : vector<4x8xf32> to vector<4x1xf32>
    %163 = vector.extract_strided_slice %154 {offsets = [1, 0], sizes = [1, 512], strides = [1, 1]} : vector<8x512xf32> to vector<1x512xf32>
    %164 = vector.broadcast %162 : vector<4x1xf32> to vector<4x512xf32>
    %165 = vector.broadcast %163 : vector<1x512xf32> to vector<4x512xf32>
    %166 = arith.mulf %164, %165 : vector<4x512xf32>
    %167 = arith.addf %161, %166 : vector<4x512xf32>
    %168 = vector.extract_strided_slice %155 {offsets = [0, 2], sizes = [4, 1], strides = [1, 1]} : vector<4x8xf32> to vector<4x1xf32>
    %169 = vector.extract_strided_slice %154 {offsets = [2, 0], sizes = [1, 512], strides = [1, 1]} : vector<8x512xf32> to vector<1x512xf32>
    %170 = vector.broadcast %168 : vector<4x1xf32> to vector<4x512xf32>
    %171 = vector.broadcast %169 : vector<1x512xf32> to vector<4x512xf32>
    %172 = arith.mulf %170, %171 : vector<4x512xf32>
    %173 = arith.addf %167, %172 : vector<4x512xf32>
    %174 = vector.extract_strided_slice %155 {offsets = [0, 3], sizes = [4, 1], strides = [1, 1]} : vector<4x8xf32> to vector<4x1xf32>
    %175 = vector.extract_strided_slice %154 {offsets = [3, 0], sizes = [1, 512], strides = [1, 1]} : vector<8x512xf32> to vector<1x512xf32>
    %176 = vector.broadcast %174 : vector<4x1xf32> to vector<4x512xf32>
    %177 = vector.broadcast %175 : vector<1x512xf32> to vector<4x512xf32>
    %178 = arith.mulf %176, %177 : vector<4x512xf32>
    %179 = arith.addf %173, %178 : vector<4x512xf32>
    %180 = vector.extract_strided_slice %155 {offsets = [0, 4], sizes = [4, 1], strides = [1, 1]} : vector<4x8xf32> to vector<4x1xf32>
    %181 = vector.extract_strided_slice %154 {offsets = [4, 0], sizes = [1, 512], strides = [1, 1]} : vector<8x512xf32> to vector<1x512xf32>
    %182 = vector.broadcast %180 : vector<4x1xf32> to vector<4x512xf32>
    %183 = vector.broadcast %181 : vector<1x512xf32> to vector<4x512xf32>
    %184 = arith.mulf %182, %183 : vector<4x512xf32>
    %185 = arith.addf %179, %184 : vector<4x512xf32>
    %186 = vector.extract_strided_slice %155 {offsets = [0, 5], sizes = [4, 1], strides = [1, 1]} : vector<4x8xf32> to vector<4x1xf32>
    %187 = vector.extract_strided_slice %154 {offsets = [5, 0], sizes = [1, 512], strides = [1, 1]} : vector<8x512xf32> to vector<1x512xf32>
    %188 = vector.broadcast %186 : vector<4x1xf32> to vector<4x512xf32>
    %189 = vector.broadcast %187 : vector<1x512xf32> to vector<4x512xf32>
    %190 = arith.mulf %188, %189 : vector<4x512xf32>
    %191 = arith.addf %185, %190 : vector<4x512xf32>
    %192 = vector.extract_strided_slice %155 {offsets = [0, 6], sizes = [4, 1], strides = [1, 1]} : vector<4x8xf32> to vector<4x1xf32>
    %193 = vector.extract_strided_slice %154 {offsets = [6, 0], sizes = [1, 512], strides = [1, 1]} : vector<8x512xf32> to vector<1x512xf32>
    %194 = vector.broadcast %192 : vector<4x1xf32> to vector<4x512xf32>
    %195 = vector.broadcast %193 : vector<1x512xf32> to vector<4x512xf32>
    %196 = arith.mulf %194, %195 : vector<4x512xf32>
    %197 = arith.addf %191, %196 : vector<4x512xf32>
    %198 = vector.extract_strided_slice %155 {offsets = [0, 7], sizes = [4, 1], strides = [1, 1]} : vector<4x8xf32> to vector<4x1xf32>
    %199 = vector.extract_strided_slice %154 {offsets = [7, 0], sizes = [1, 512], strides = [1, 1]} : vector<8x512xf32> to vector<1x512xf32>
    %200 = vector.broadcast %198 : vector<4x1xf32> to vector<4x512xf32>
    %201 = vector.broadcast %199 : vector<1x512xf32> to vector<4x512xf32>
    %202 = arith.mulf %200, %201 : vector<4x512xf32>
    %203 = arith.addf %197, %202 : vector<4x512xf32>
    %204 = vector.broadcast %156 : vector<4x1xf32> to vector<4x512xf32>
    %205 = arith.addf %203, %204 : vector<4x512xf32>
    %c0_14 = arith.constant 0 : index
    %c0_15 = arith.constant 0 : index
    %206 = vector.load %arg8[%c0_14, %c0_15] : memref<4x512xf32, #tpu.memory_space<vmem>>, vector<4x512xf32>
    tpu.vector_store %arg8[%c0_14, %c0_15], %205 {strides = array<i32>} : memref<4x512xf32, #tpu.memory_space<vmem>>, vector<4x512xf32>,
    return
  }
  func.func @transform_0(%arg0: i32) -> (i32, i32) {
    %c0_i32 = arith.constant 0 : i32
    %c0_i32_0 = arith.constant 0 : i32
    return %c0_i32, %arg0 : i32, i32
  }
  func.func @transform_1(%arg0: i32) -> (i32, i32) {
    %c0_i32 = arith.constant 0 : i32
    %c0_i32_0 = arith.constant 0 : i32
    %c0_i32_1 = arith.constant 0 : i32
    return %c0_i32, %c0_i32_0 : i32, i32
  }
  func.func @transform_2(%arg0: i32) -> (i32, i32) {
    %c0_i32 = arith.constant 0 : i32
    %c0_i32_0 = arith.constant 0 : i32
    %c0_i32_1 = arith.constant 0 : i32
    return %c0_i32, %c0_i32_0 : i32, i32
  }
  func.func @transform_3(%arg0: i32) -> (i32, i32) {
    %c0_i32 = arith.constant 0 : i32
    %c0_i32_0 = arith.constant 0 : i32
    %c0_i32_1 = arith.constant 0 : i32
    return %c0_i32, %c0_i32_0 : i32, i32
  }
  func.func @transform_4(%arg0: i32) -> (i32, i32) {
    %c0_i32 = arith.constant 0 : i32
    %c0_i32_0 = arith.constant 0 : i32
    %c0_i32_1 = arith.constant 0 : i32
    return %c0_i32, %c0_i32_0 : i32, i32
  }
  func.func @transform_5(%arg0: i32) -> (i32, i32) {
    %c0_i32 = arith.constant 0 : i32
    %c0_i32_0 = arith.constant 0 : i32
    %c0_i32_1 = arith.constant 0 : i32
    return %c0_i32, %c0_i32_0 : i32, i32
  }
  func.func @transform_6(%arg0: i32) -> (i32, i32) {
    %c0_i32 = arith.constant 0 : i32
    %c0_i32_0 = arith.constant 0 : i32
    %c0_i32_1 = arith.constant 0 : i32
    return %c0_i32, %c0_i32_0 : i32, i32
  }
  func.func @transform_7(%arg0: i32) -> (i32, i32) {
    %c0_i32 = arith.constant 0 : i32
    %c0_i32_0 = arith.constant 0 : i32
    return %c0_i32, %arg0 : i32, i32
  }
}

</mosaic_0001>

<bundles_post_ra>
// kernel: dqn_forward.1
= control target key start
LH: loop header
LB: loop body
LE: loop exit
PB: predicated region body
PF: predicated region fallthrough
CT: control target
= control target key end

     0   :  { %v755_v0 = vmov 5   ;;  %v756_v1 = vmov 2   ;;  %v757_v4 = vmov 1   ;;  %v758_v5 = vmov 0   ;;  %s1248_s1 = inlined_call_operand.vmem [shape: f32[16,8], index: 1, kind: input, shape index: {}]   ;;  %s1249_s2 = inlined_call_operand.vmem [shape: f32[16,1], index: 2, kind: input, shape index: {}]   ;;  %s1250_s3 = inlined_call_operand.vmem [shape: f32[8,16], index: 3, kind: input, shape index: {}]   ;;  %s1251_s5 = inlined_call_operand.vmem [shape: f32[4,8], index: 5, kind: input, shape index: {}]   ;;  %s1252_s4 = inlined_call_operand.vmem [shape: f32[8,1], index: 4, kind: input, shape index: {}]   ;;  %s1253_s0 = inlined_call_operand.vmem [shape: f32[8,512], index: 0, kind: input, shape index: {}]   ;;  %s1254_s6 = inlined_call_operand.vmem [shape: f32[4,1], index: 6, kind: input, shape index: {}]   ;;  %s1255_s7 = inlined_call_operand.vmem [shape: f32[4,512], index: 7, kind: output, shape index: {}]  }
   0x1   :  { %721 = vset.pattern.permute.xlu0 %v755_v0  ;;  %716 = vset.pattern.permute.xlu2 %v756_v1  ;;  %v31_v2 = vld [vmem:[%s1248_s1 + $0x8] sm:$0xff]  ;;  %v30_v3 = vld [vmem:[%s1248_s1] sm:$0xff]  ;;  %v759_v6 = vmov 4   ;;  %v760_v7 = vmov 3   ;;  %v761_v9 = vmov 6   ;;  %v762_v11 = vmov 7  }
   0x2   :  { %715 = vset.pattern.permute.xlu1 %v757_v4  ;;  %173 = vperm.xlu0 %721, %v31_v2   ;;  %v32_v8 = vld [vmem:[%s1249_s2] sm:$0xff]  ;;  %v763_v12 = vmov 8   ;;  %v33_v13 = vld [vmem:[%s1249_s2 + $0x8] sm:$0xff]  ;;  %v764_v14 = vmov 13   ;;  %v765_v16 = vmov 10   ;;  %v766_v17 = vmov 9  }
   0x3   :  { %85 = vperm.xlu2 %716, %v30_v3   ;;  %57 = vperm.xlu1 %715, %v30_v3   ;;  %v278_v10 = vld [vmem:[%s1250_s3] sm:$0xff]  ;;  %v767_v18 = vmov 12   ;;  %v768_v19 = vmov 11   ;;  %v769_v21 = vmov 15   ;;  %v770_v22 = vmov 14   ;;  %v878_v31 = vld [vmem:[%s1253_s0 + $0x8] sm:$0xff] }
   0x4   :  { %v844_v15 = vld [vmem:[%s1251_s5] sm:$0xf]  ;;  %v883_v32 = vld [vmem:[%s1253_s0 + $0x10] sm:$0xff]  ;;  %v888_v33 = vld [vmem:[%s1253_s0 + $0x18] sm:$0xff]  ;;  %v93_v36 = vperm.slane %v878_v31, 2  ;;  %v149_v42 = vperm.slane %v878_v31, 4 }
   0x5   :  { %v279_v26 = vld [vmem:[%s1252_s4] sm:$0xff]  ;;  %v94_v37 = vperm.slane %v883_v32, 2  ;;  %v95_v38 = vperm.slane %v888_v33, 2  ;;  %v150_v43 = vperm.slane %v883_v32, 4  ;;  %v151_v44 = vperm.slane %v888_v33, 4 }
   0x6   :  { %v873_v30 = vld [vmem:[%s1253_s0] sm:$0xff]  ;;  %v65_v46 = vperm.slane %v878_v31, 1  ;;  %v66_v47 = vperm.slane %v883_v32, 1  ;;  %v67_v48 = vperm.slane %v888_v33, 1  ;;  %v45_v50 = vperm.slane %v878_v31, 0 }
   0x7   :  { %v92_v35 = vperm.slane %v873_v30, 2  ;;  %v148_v41 = vperm.slane %v873_v30, 4  ;;  %v64_v45 = vperm.slane %v873_v30, 1  ;;  %v44_v49 = vperm.slane %v873_v30, 0 }
   0x8   :  { %v46_v51 = vperm.slane %v883_v32, 0  ;;  %v47_v52 = vperm.slane %v888_v33, 0  ;;  %v176_v53 = vperm.slane %v873_v30, 5  ;;  %v177_v54 = vperm.slane %v878_v31, 5 }
   0x9   :  { %v178_v55 = vperm.slane %v883_v32, 5  ;;  %v179_v56 = vperm.slane %v888_v33, 5  ;;  %v204_v61 = vperm.slane %v873_v30, 6  ;;  %vm688_vm0 = vcmask 1043456  }
   0xa   :  { %722 = vset.pattern.permute.xlu0 %v758_v5 }
   0xb   :  { %89 = vperm.xlu2 %716, %v31_v2   ;;  %61 = vperm.xlu1 %715, %v31_v2  }
   0xc   :  { %36 = vperm.xlu0 %722, %v30_v3  }
  0x13   :  { %718 = vset.pattern.permute.xlu2 %v759_v6  ;;  %717 = vset.pattern.permute.xlu1 %v760_v7 }
  0x14   :  { %41 = vperm.xlu0 %722, %v31_v2   ;;  %141 = vperm.xlu2 %718, %v30_v3  }
  0x15   :  { %117 = vperm.xlu1 %717, %v31_v2  }
  0x1c   :  { %254 = vperm.xlu0 %722, %v32_v8   ;;  %720 = vset.pattern.permute.xlu2 %v755_v0 }
  0x1d   :  { %719 = vset.pattern.permute.xlu1 %v759_v6  ;;  %169 = vperm.xlu2 %720, %v30_v3  }
  0x1e   :  { %145 = vperm.xlu1 %719, %v31_v2  }
  0x24   :  { %727 = vset.pattern.permute.xlu0 %v760_v7 }
  0x25   :  { %113 = vperm.xlu0 %727, %v30_v3   ;;  %724 = vset.pattern.permute.xlu2 %v761_v9 }
  0x26   :  { %723 = vset.pattern.permute.xlu1 %v761_v9  ;;  %201 = vperm.xlu2 %724, %v31_v2  }
  0x27   :  { %197 = vperm.xlu1 %723, %v30_v3  }
  0x2d   :  { %326 = vperm.xlu0 %727, %v278_v10  }
  0x2e   :  { %726 = vset.pattern.permute.xlu2 %v762_v11 }
  0x2f   :  { %725 = vset.pattern.permute.xlu1 %v762_v11  ;;  %229 = vperm.xlu2 %726, %v31_v2  }
  0x30   :  { %225 = vperm.xlu1 %725, %v30_v3  }
  0x35   :  { %736 = vset.pattern.permute.xlu0 %v763_v12 }
  0x36   :  { %406 = vperm.xlu0 %736, %v278_v10  }
  0x37   :  { %729 = vset.pattern.permute.xlu2 %v758_v5 }
  0x38   :  { %728 = vset.pattern.permute.xlu1 %v758_v5  ;;  %282 = vperm.xlu2 %729, %v278_v10  }
  0x39   :  { %259 = vperm.xlu1 %728, %v33_v13  }
  0x3e   :  { %741 = vset.pattern.permute.xlu0 %v764_v14 }
  0x3f   :  { %486 = vperm.xlu0 %741, %v278_v10  }
  0x40   :  { %731 = vset.pattern.permute.xlu2 %v756_v1 }
  0x41   :  { %730 = vset.pattern.permute.xlu1 %v757_v4  ;;  %310 = vperm.xlu2 %731, %v278_v10  }
  0x42   :  { %294 = vperm.xlu1 %730, %v278_v10  }
  0x47   :  { %746 = vset.pattern.permute.xlu0 %v757_v4 }
  0x48   :  { %562 = vperm.xlu0 %746, %v844_v15  }
  0x49   :  { %733 = vset.pattern.permute.xlu2 %v755_v0 }
  0x4a   :  { %732 = vset.pattern.permute.xlu1 %v759_v6  ;;  %358 = vperm.xlu2 %733, %v278_v10  }
  0x4b   :  { %342 = vperm.xlu1 %732, %v278_v10  }
  0x50   :  { %751 = vset.pattern.permute.xlu0 %v761_v9 }
  0x51   :  { %642 = vperm.xlu0 %751, %v844_v15  }
  0x52   :  { %735 = vset.pattern.permute.xlu2 %v762_v11 }
  0x53   :  { %734 = vset.pattern.permute.xlu1 %v761_v9  ;;  %390 = vperm.xlu2 %735, %v278_v10  }
  0x54   :  { %374 = vperm.xlu1 %734, %v278_v10  }
  0x59   :  { %754 = vset.pattern.permute.xlu0 %v758_v5 }
  0x5b   :  { %738 = vset.pattern.permute.xlu2 %v765_v16 }
  0x5c   :  { %737 = vset.pattern.permute.xlu1 %v766_v17  ;;  %438 = vperm.xlu2 %738, %v278_v10  }
  0x5d   :  { %422 = vperm.xlu1 %737, %v278_v10   ;;  %v86_v20 = vpop.permute.xlu2 %85 }
  0x5e   :  { %v96_v57 = vmul.f32 %v92_v35, %v86_v20  ;;  %v97_v58 = vmul.f32 %v93_v36, %v86_v20  ;;  %v98_v59 = vmul.f32 %v94_v37, %v86_v20  ;;  %v99_v60 = vmul.f32 %v95_v38, %v86_v20 }
  0x5f   :  { %v121_v20 = vperm.slane %v878_v31, 3 }
  0x64   :  { %740 = vset.pattern.permute.xlu2 %v767_v18 }
  0x65   :  { %739 = vset.pattern.permute.xlu1 %v768_v19  ;;  %470 = vperm.xlu2 %740, %v278_v10   ;;  %v850_v23 = vpop.permute.xlu2 %89  ;;  %v120_v19 = vperm.slane %v873_v30, 3 }
  0x66   :  { %454 = vperm.xlu1 %739, %v278_v10   ;;  %v938_v8 = vmul.f32 %v93_v36, %v850_v23  ;;  %v941_v9 = vmul.f32 %v94_v37, %v850_v23 }
  0x6d   :  { %743 = vset.pattern.permute.xlu2 %v769_v21  ;;  %v122_v21 = vperm.slane %v883_v32, 3 }
  0x6e   :  { %742 = vset.pattern.permute.xlu1 %v770_v22  ;;  %518 = vperm.xlu2 %743, %v278_v10   ;;  %v862_v27 = vpop.permute.xlu2 %141  ;;  %v123_v22 = vperm.slane %v888_v33, 3 }
  0x6f   :  { %502 = vperm.xlu1 %742, %v278_v10   ;;  %v944_v10 = vmul.f32 %v95_v38, %v850_v23 }
  0x74   :  { %v852_v24 = vpop.permute.xlu0 %173 }
  0x75   :  { %v854_v25 = vpop.permute.xlu1 %57 }
  0x76   :  { %745 = vset.pattern.permute.xlu2 %v758_v5  ;;  %v68_v12 = vmul.f32 %v64_v45, %v854_v25  ;;  %v69_v13 = vmul.f32 %v65_v46, %v854_v25  ;;  %v70_v14 = vmul.f32 %v66_v47, %v854_v25  ;;  %v71_v16 = vmul.f32 %v67_v48, %v854_v25  ;;  %v547_v25 = vld [vmem:[%s1254_s6] sm:$0xf] }
  0x77   :  { %744 = vset.pattern.permute.xlu1 %v758_v5  ;;  %550 = vperm.xlu2 %745, %v844_v15   ;;  %v896_v39 = vpop.permute.xlu2 %169 }
  0x78   :  { %535 = vperm.xlu1 %744, %v279_v26  }
  0x7d   :  { %v864_v28 = vpop.permute.xlu1 %61 }
  0x7e   :  { %v37_v29 = vpop.permute.xlu0 %36 }
  0x7f   :  { %748 = vset.pattern.permute.xlu2 %v760_v7  ;;  %v49_v2 = vmul.f32 %v45_v50, %v37_v29  ;;  %v50_v3 = vmul.f32 %v46_v51, %v37_v29  ;;  %v51_v4 = vmul.f32 %v47_v52, %v37_v29  ;;  %v935_v7 = vmul.f32 %v92_v35, %v850_v23 }
  0x80   :  { %747 = vset.pattern.permute.xlu1 %v756_v1  ;;  %594 = vperm.xlu2 %748, %v844_v15   ;;  %v48_v1 = vmul.f32 %v44_v49, %v37_v29  ;;  %v960_v18 = vpop.permute.xlu2 %201 }
  0x81   :  { %578 = vperm.xlu1 %747, %v844_v15   ;;  %v77_v26 = vadd.f32 %v69_v13, %v49_v2  ;;  %v78_v29 = vadd.f32 %v70_v14, %v50_v3  ;;  %v79_v35 = vadd.f32 %v71_v16, %v51_v4  ;;  %v154_v2 = vmul.f32 %v150_v43, %v862_v27 }
  0x82   :  { %v76_v23 = vadd.f32 %v68_v12, %v48_v1  ;;  %v152_v1 = vmul.f32 %v148_v41, %v862_v27  ;;  %v155_v3 = vmul.f32 %v151_v44, %v862_v27  ;;  %v996_v4 = vmul.f32 %v177_v54, %v852_v24 }
  0x83   :  { %v1001_v12 = vmul.f32 %v178_v55, %v852_v24  ;;  %v105_v13 = vadd.f32 %v97_v58, %v77_v26  ;;  %v106_v14 = vadd.f32 %v98_v59, %v78_v29  ;;  %v107_v16 = vadd.f32 %v99_v60, %v79_v35 }
  0x86   :  { %v890_v34 = vpop.permute.xlu0 %41 }
  0x87   :  { %v898_v40 = vpop.permute.xlu1 %117  ;;  %v53_v38 = vmul.f32 %v45_v50, %v890_v34  ;;  %v54_v37 = vmul.f32 %v46_v51, %v890_v34  ;;  %v73_v50 = vmul.f32 %v65_v46, %v864_v28  ;;  %v74_v51 = vmul.f32 %v66_v47, %v864_v28 }
  0x88   :  { %750 = vset.pattern.permute.xlu2 %v755_v0  ;;  %v52_v0 = vmul.f32 %v44_v49, %v890_v34  ;;  %v72_v49 = vmul.f32 %v64_v45, %v864_v28  ;;  %v180_v46 = vmul.f32 %v176_v53, %v896_v39  ;;  %v181_v47 = vmul.f32 %v177_v54, %v896_v39 }
  0x89   :  { %749 = vset.pattern.permute.xlu1 %v759_v6  ;;  %626 = vperm.xlu2 %750, %v844_v15   ;;  %v81_v36 = vadd.f32 %v73_v50, %v53_v38  ;;  %v82_v45 = vadd.f32 %v74_v51, %v54_v37  ;;  %v1032_v62 = vpop.permute.xlu2 %229  ;;  %v131_v54 = vmul.f32 %v123_v22, %v898_v40 }
  0x8a   :  { %610 = vperm.xlu1 %749, %v844_v15  }
  0x8e   :  { %v932_v6 = vpop.permute.xlu0 %254 }
  0x90   :  { %v958_v17 = vpop.permute.xlu1 %145 }
  0x91   :  { %753 = vset.pattern.permute.xlu2 %v758_v5  ;;  %v104_v5 = vadd.f32 %v96_v57, %v76_v23 }
  0x92   :  { %752 = vset.pattern.permute.xlu1 %v762_v11  ;;  %v153_v11 = vmul.f32 %v149_v42, %v862_v27  ;;  %v1006_v27 = vmul.f32 %v179_v56, %v852_v24  ;;  %675 = vperm.xlu2 %753, %v547_v25  }
  0x93   :  { %658 = vperm.xlu1 %752, %v844_v15   ;;  %v991_v15 = vmul.f32 %v176_v53, %v852_v24  ;;  %v55_v24 = vmul.f32 %v47_v52, %v890_v34  ;;  %v75_v34 = vmul.f32 %v67_v48, %v864_v28  ;;  %v182_v28 = vmul.f32 %v178_v55, %v896_v39 }
  0x94   :  { %v183_v48 = vmul.f32 %v179_v56, %v896_v39  ;;  %v129_v53 = vmul.f32 %v121_v20, %v898_v40  ;;  %v109_v55 = vadd.f32 %v938_v8, %v81_v36  ;;  %v156_v56 = vmul.f32 %v148_v41, %v958_v17 }
  0x95   :  { %v83_v63 = vadd.f32 %v75_v34, %v55_v24  ;;  %v110_v24 = vadd.f32 %v941_v9, %v82_v45  ;;  %v1256_v41 = vperm.slane %v878_v31, 6  ;;  %v1258_v36 = vperm.slane %v888_v33, 6  ;;  %v283_v34 = vpop.permute.xlu2 %282 }
  0x97   :  { %v114_v57 = vpop.permute.xlu0 %113  ;;  %v111_v39 = vadd.f32 %v944_v10, %v83_v63 }
  0x98   :  { %v124_v58 = vmul.f32 %v120_v19, %v114_v57  ;;  %v125_v59 = vmul.f32 %v121_v20, %v114_v57  ;;  %v126_v60 = vmul.f32 %v122_v21, %v114_v57  ;;  %v127_v23 = vmul.f32 %v123_v22, %v114_v57 }
  0x99   :  { %v198_v52 = vpop.permute.xlu1 %197  ;;  %v80_v57 = vadd.f32 %v72_v49, %v52_v0  ;;  %v137_v49 = vadd.f32 %v129_v53, %v109_v55  ;;  %v139_v51 = vadd.f32 %v131_v54, %v111_v39 }
  0x9a   :  { %v132_v26 = vadd.f32 %v124_v58, %v104_v5  ;;  %v133_v29 = vadd.f32 %v125_v59, %v105_v13  ;;  %v134_v35 = vadd.f32 %v126_v60, %v106_v14  ;;  %v135_v25 = vadd.f32 %v127_v23, %v107_v16 }
  0x9b   :  { %v128_v13 = vmul.f32 %v120_v19, %v898_v40  ;;  %v130_v14 = vmul.f32 %v122_v21, %v898_v40  ;;  %v108_v16 = vadd.f32 %v935_v7, %v80_v57  ;;  %v157_v19 = vmul.f32 %v149_v42, %v958_v17 }
  0x9c   :  { %v160_v0 = vadd.f32 %v152_v1, %v132_v26  ;;  %v161_v37 = vadd.f32 %v153_v11, %v133_v29  ;;  %v162_v38 = vadd.f32 %v154_v2, %v134_v35  ;;  %v163_v5 = vadd.f32 %v155_v3, %v135_v25 }
  0x9d   :  { %v158_v40 = vmul.f32 %v150_v43, %v958_v17  ;;  %v159_v7 = vmul.f32 %v151_v44, %v958_v17  ;;  %v208_v10 = vmul.f32 %v204_v61, %v198_v52  ;;  %v209_v21 = vmul.f32 %v1256_v41, %v198_v52 }
  0x9e   :  { %v188_v8 = vadd.f32 %v180_v46, %v160_v0  ;;  %v189_v9 = vadd.f32 %v181_v47, %v161_v37  ;;  %v190_v20 = vadd.f32 %v182_v28, %v162_v38  ;;  %v191_v63 = vadd.f32 %v183_v48, %v163_v5 }
  0x9f   :  { %v1257_v42 = vperm.slane %v883_v32, 6  ;;  %v211_v43 = vmul.f32 %v1258_v36, %v198_v52  ;;  %v1259_v11 = vperm.slane %v873_v30, 7  ;;  %v1260_v17 = vperm.slane %v878_v31, 7 }
  0xa0   :  { %v1261_v3 = vperm.slane %v883_v32, 7  ;;  %v1262_v59 = vperm.slane %v888_v33, 7  ;;  %v136_v23 = vadd.f32 %v128_v13, %v108_v16  ;;  %v138_v50 = vadd.f32 %v130_v14, %v110_v24 }
  0xa1   :  { %v210_v22 = vmul.f32 %v1257_v42, %v198_v52  ;;  %v216_v26 = vadd.f32 %v208_v10, %v188_v8  ;;  %v217_v52 = vadd.f32 %v209_v21, %v189_v9  ;;  %v219_v35 = vadd.f32 %v211_v43, %v191_v63  ;;  %v311_v21 = vpop.permute.xlu2 %310 }
  0xa2   :  { %v226_v1 = vpop.permute.xlu1 %225  ;;  %v164_v25 = vadd.f32 %v156_v56, %v136_v23  ;;  %v165_v57 = vadd.f32 %v157_v19, %v137_v49  ;;  %v166_v45 = vadd.f32 %v158_v40, %v138_v50  ;;  %v167_v46 = vadd.f32 %v159_v7, %v139_v51 }
  0xa3   :  { %v236_v44 = vmul.f32 %v1259_v11, %v226_v1  ;;  %v237_v2 = vmul.f32 %v1260_v17, %v226_v1  ;;  %v238_v58 = vmul.f32 %v1261_v3, %v226_v1  ;;  %v239_v60 = vmul.f32 %v1262_v59, %v226_v1 }
  0xa4   :  { %v218_v29 = vadd.f32 %v210_v22, %v190_v20  ;;  %v212_v37 = vmul.f32 %v204_v61, %v960_v18  ;;  %v1263_v38 = vmov %v1256_v41  ;;  %v1264_v13 = vmov %v1257_v42 }
  0xa5   :  { %v244_v47 = vadd.f32 %v236_v44, %v216_v26  ;;  %v245_v28 = vadd.f32 %v237_v2, %v217_v52  ;;  %v247_v0 = vadd.f32 %v239_v60, %v219_v35  ;;  %v213_v5 = vmul.f32 %v1263_v38, %v960_v18 }
  0xa6   :  { %v246_v48 = vadd.f32 %v238_v58, %v218_v29  ;;  %v214_v53 = vmul.f32 %v1264_v13, %v960_v18  ;;  %v1265_v14 = vmov %v1258_v36  ;;  %v192_v16 = vadd.f32 %v991_v15, %v164_v25 }
  0xa7   :  { %v215_v54 = vmul.f32 %v1265_v14, %v960_v18  ;;  %v193_v55 = vadd.f32 %v996_v4, %v165_v57  ;;  %v194_v24 = vadd.f32 %v1001_v12, %v166_v45  ;;  %v195_v61 = vadd.f32 %v1006_v27, %v167_v46 }
  0xa8   :  { %v262_v39 = vadd.f32 %v932_v6, %v244_v47  ;;  %v263_v56 = vadd.f32 %v932_v6, %v245_v28  ;;  %v264_v19 = vadd.f32 %v932_v6, %v246_v48  ;;  %v265_v40 = vadd.f32 %v932_v6, %v247_v0 }
  0xa9   :  { %v1266_v18 = vmov %v1259_v11  ;;  %v1267_v15 = vmov %v1260_v17  ;;  %v1268_v12 = vmov %v1261_v3  ;;  %v1269_v9 = vmov %v1262_v59  ;;  %v359_v0 = vpop.permute.xlu2 %358 }
  0xaa   :  { %v240_v8 = vmul.f32 %v1266_v18, %v1032_v62  ;;  %v241_v4 = vmul.f32 %v1267_v15, %v1032_v62  ;;  %v242_v27 = vmul.f32 %v1268_v12, %v1032_v62  ;;  %v243_v20 = vmul.f32 %v1269_v9, %v1032_v62 }
  0xab   :  { %v260_v7 = vpop.permute.xlu1 %259  ;;  %v220_v63 = vadd.f32 %v212_v37, %v192_v16  ;;  %v221_v10 = vadd.f32 %v213_v5, %v193_v55  ;;  %v222_v6 = vadd.f32 %v214_v53, %v194_v24  ;;  %v223_v41 = vadd.f32 %v215_v54, %v195_v61 }
  0xac   :  { %v1114_v42 = vmax.f32 %v262_v39, 0.0  ;;  %v1116_v30 = vmax.f32 %v263_v56, 0.0  ;;  %v1118_v22 = vmax.f32 %v264_v19, 0.0  ;;  %v1120_v31 = vmax.f32 %v265_v40, 0.0 }
  0xad   :  { %v248_v36 = vadd.f32 %v240_v8, %v220_v63  ;;  %v249_v32 = vadd.f32 %v241_v4, %v221_v10  ;;  %v250_v43 = vadd.f32 %v242_v27, %v222_v6  ;;  %v251_v1 = vadd.f32 %v243_v20, %v223_v41  ;;  %v327_v27 = vpop.permute.xlu0 %326 }
  0xae   :  { %v285_v33 = vperm.slane %v1114_v42, 0  ;;  %v286_v62 = vperm.slane %v1116_v30, 0  ;;  %v287_v11 = vperm.slane %v1118_v22, 0  ;;  %v288_v44 = vperm.slane %v1120_v31, 0 }
  0xaf   :  { %v297_v2 = vperm.slane %v1114_v42, 1  ;;  %v298_v3 = vperm.slane %v1116_v30, 1  ;;  %v299_v58 = vperm.slane %v1118_v22, 1  ;;  %v300_v59 = vperm.slane %v1120_v31, 1 }
  0xb0   :  { %v289_v60 = vmul.f32 %v285_v33, %v283_v34  ;;  %v290_v23 = vmul.f32 %v286_v62, %v283_v34  ;;  %v291_v49 = vmul.f32 %v287_v11, %v283_v34  ;;  %v292_v50 = vmul.f32 %v288_v44, %v283_v34 }
  0xb1   :  { %v313_v35 = vperm.slane %v1114_v42, 2  ;;  %v314_v25 = vperm.slane %v1116_v30, 2  ;;  %v315_v57 = vperm.slane %v1118_v22, 2  ;;  %v316_v45 = vperm.slane %v1120_v31, 2 }
  0xb2   :  { %v361_v37 = vperm.slane %v1114_v42, 5  ;;  %v362_v34 = vperm.slane %v1116_v30, 5  ;;  %v363_v38 = vperm.slane %v1118_v22, 5  ;;  %v364_v5 = vperm.slane %v1120_v31, 5 }
  0xb3   :  { %v317_v13 = vmul.f32 %v313_v35, %v311_v21  ;;  %v318_v53 = vmul.f32 %v314_v25, %v311_v21  ;;  %v319_v14 = vmul.f32 %v315_v57, %v311_v21  ;;  %v320_v54 = vmul.f32 %v316_v45, %v311_v21 }
  0xb4   :  { %v295_v17 = vpop.permute.xlu1 %294  ;;  %v266_v16 = vadd.f32 %v260_v7, %v248_v36  ;;  %v267_v55 = vadd.f32 %v260_v7, %v249_v32  ;;  %v268_v24 = vadd.f32 %v260_v7, %v250_v43  ;;  %v269_v61 = vadd.f32 %v260_v7, %v251_v1 }
  0xb5   :  { %v301_v51 = vmul.f32 %v297_v2, %v295_v17  ;;  %v302_v26 = vmul.f32 %v298_v3, %v295_v17  ;;  %v303_v52 = vmul.f32 %v299_v58, %v295_v17  ;;  %v304_v29 = vmul.f32 %v300_v59, %v295_v17  ;;  %v391_v59 = vpop.permute.xlu2 %390 }
  0xb6   :  { %v329_v8 = vperm.slane %v1114_v42, 3  ;;  %v330_v15 = vperm.slane %v1116_v30, 3  ;;  %v331_v4 = vperm.slane %v1118_v22, 3  ;;  %v332_v12 = vperm.slane %v1120_v31, 3 }
  0xb7   :  { %v305_v46 = vadd.f32 %v301_v51, %v289_v60  ;;  %v306_v47 = vadd.f32 %v302_v26, %v290_v23  ;;  %v307_v28 = vadd.f32 %v303_v52, %v291_v49  ;;  %v308_v48 = vadd.f32 %v304_v29, %v292_v50 }
  0xb8   :  { %v345_v9 = vperm.slane %v1114_v42, 4  ;;  %v346_v20 = vperm.slane %v1116_v30, 4  ;;  %v347_v7 = vperm.slane %v1118_v22, 4  ;;  %v348_v63 = vperm.slane %v1120_v31, 4 }
  0xb9   :  { %v321_v39 = vadd.f32 %v317_v13, %v305_v46  ;;  %v322_v56 = vadd.f32 %v318_v53, %v306_v47  ;;  %v323_v19 = vadd.f32 %v319_v14, %v307_v28  ;;  %v324_v40 = vadd.f32 %v320_v54, %v308_v48 }
  0xba   :  { %v333_v10 = vmul.f32 %v329_v8, %v327_v27  ;;  %v334_v6 = vmul.f32 %v330_v15, %v327_v27  ;;  %v335_v41 = vmul.f32 %v331_v4, %v327_v27  ;;  %v336_v21 = vmul.f32 %v332_v12, %v327_v27  ;;  %v407_v27 = vpop.permute.xlu0 %406 }
  0xbb   :  { %v365_v17 = vmul.f32 %v361_v37, %v359_v0  ;;  %v366_v2 = vmul.f32 %v362_v34, %v359_v0  ;;  %v367_v3 = vmul.f32 %v363_v38, %v359_v0  ;;  %v368_v58 = vmul.f32 %v364_v5, %v359_v0 }
  0xbc   :  { %v337_v33 = vadd.f32 %v333_v10, %v321_v39  ;;  %v338_v62 = vadd.f32 %v334_v6, %v322_v56  ;;  %v339_v11 = vadd.f32 %v335_v41, %v323_v19  ;;  %v340_v44 = vadd.f32 %v336_v21, %v324_v40 }
  0xbd   :  { %v343_v18 = vpop.permute.xlu1 %342  ;;  %v1146_v51 = vmax.f32 %v266_v16, 0.0  ;;  %v1148_v26 = vmax.f32 %v267_v55, 0.0  ;;  %v1150_v52 = vmax.f32 %v268_v24, 0.0  ;;  %v1152_v29 = vmax.f32 %v269_v61, 0.0 }
  0xbe   :  { %v349_v36 = vmul.f32 %v345_v9, %v343_v18  ;;  %v350_v32 = vmul.f32 %v346_v20, %v343_v18  ;;  %v351_v43 = vmul.f32 %v347_v7, %v343_v18  ;;  %v352_v1 = vmul.f32 %v348_v63, %v343_v18  ;;  %v439_v18 = vpop.permute.xlu2 %438 }
  0xbf   :  { %v393_v35 = vperm.slane %v1114_v42, 7  ;;  %v394_v25 = vperm.slane %v1116_v30, 7  ;;  %v395_v57 = vperm.slane %v1118_v22, 7  ;;  %v396_v45 = vperm.slane %v1120_v31, 7 }
  0xc0   :  { %v353_v60 = vadd.f32 %v349_v36, %v337_v33  ;;  %v354_v23 = vadd.f32 %v350_v32, %v338_v62  ;;  %v355_v49 = vadd.f32 %v351_v43, %v339_v11  ;;  %v356_v50 = vadd.f32 %v352_v1, %v340_v44 }
  0xc1   :  { %v377_v47 = vperm.slane %v1114_v42, 6  ;;  %v378_v28 = vperm.slane %v1116_v30, 6  ;;  %v379_v48 = vperm.slane %v1118_v22, 6  ;;  %v380_v0 = vperm.slane %v1120_v31, 6 }
  0xc2   :  { %v369_v37 = vadd.f32 %v365_v17, %v353_v60  ;;  %v370_v34 = vadd.f32 %v366_v2, %v354_v23  ;;  %v371_v38 = vadd.f32 %v367_v3, %v355_v49  ;;  %v372_v5 = vadd.f32 %v368_v58, %v356_v50 }
  0xc3   :  { %v397_v16 = vmul.f32 %v393_v35, %v391_v59  ;;  %v398_v55 = vmul.f32 %v394_v25, %v391_v59  ;;  %v399_v24 = vmul.f32 %v395_v57, %v391_v59  ;;  %v400_v61 = vmul.f32 %v396_v45, %v391_v59 }
  0xc4   :  { %v409_v22 = vperm.slane %v1146_v51, 0  ;;  %v410_v31 = vperm.slane %v1148_v26, 0  ;;  %v411_v19 = vperm.slane %v1150_v52, 0  ;;  %v412_v40 = vperm.slane %v1152_v29, 0 }
  0xc5   :  { %v425_v9 = vperm.slane %v1146_v51, 1  ;;  %v426_v20 = vperm.slane %v1148_v26, 1  ;;  %v427_v7 = vperm.slane %v1150_v52, 1  ;;  %v428_v63 = vperm.slane %v1152_v29, 1 }
  0xc6   :  { %v375_v46 = vpop.permute.xlu1 %374  ;;  %v413_v6 = vmul.f32 %v409_v22, %v407_v27  ;;  %v414_v41 = vmul.f32 %v410_v31, %v407_v27  ;;  %v415_v21 = vmul.f32 %v411_v19, %v407_v27  ;;  %v416_v36 = vmul.f32 %v412_v40, %v407_v27  ;;  %v487_v27 = vpop.permute.xlu0 %486 }
  0xc7   :  { %v381_v13 = vmul.f32 %v377_v47, %v375_v46  ;;  %v382_v53 = vmul.f32 %v378_v28, %v375_v46  ;;  %v383_v14 = vmul.f32 %v379_v48, %v375_v46  ;;  %v384_v54 = vmul.f32 %v380_v0, %v375_v46  ;;  %v471_v46 = vpop.permute.xlu2 %470 }
  0xc8   :  { %v441_v2 = vperm.slane %v1146_v51, 2  ;;  %v442_v3 = vperm.slane %v1148_v26, 2  ;;  %v443_v58 = vperm.slane %v1150_v52, 2  ;;  %v444_v59 = vperm.slane %v1152_v29, 2 }
  0xc9   :  { %v385_v39 = vadd.f32 %v381_v13, %v369_v37  ;;  %v386_v42 = vadd.f32 %v382_v53, %v370_v34  ;;  %v387_v56 = vadd.f32 %v383_v14, %v371_v38  ;;  %v388_v30 = vadd.f32 %v384_v54, %v372_v5 }
  0xca   :  { %v445_v35 = vmul.f32 %v441_v2, %v439_v18  ;;  %v446_v25 = vmul.f32 %v442_v3, %v439_v18  ;;  %v447_v57 = vmul.f32 %v443_v58, %v439_v18  ;;  %v448_v45 = vmul.f32 %v444_v59, %v439_v18 }
  0xcb   :  { %v401_v8 = vadd.f32 %v397_v16, %v385_v39  ;;  %v402_v15 = vadd.f32 %v398_v55, %v386_v42  ;;  %v403_v4 = vadd.f32 %v399_v24, %v387_v56  ;;  %v404_v12 = vadd.f32 %v400_v61, %v388_v30 }
  0xcc   :  { %v457_v47 = vperm.slane %v1146_v51, 3  ;;  %v458_v28 = vperm.slane %v1148_v26, 3  ;;  %v459_v48 = vperm.slane %v1150_v52, 3  ;;  %v460_v0 = vperm.slane %v1152_v29, 3 }
  0xcd   :  { %v417_v62 = vadd.f32 %v413_v6, %v401_v8  ;;  %v418_v11 = vadd.f32 %v414_v41, %v402_v15  ;;  %v419_v44 = vadd.f32 %v415_v21, %v403_v4  ;;  %v420_v17 = vadd.f32 %v416_v36, %v404_v12 }
  0xce   :  { %v473_v55 = vperm.slane %v1146_v51, 4  ;;  %v474_v24 = vperm.slane %v1148_v26, 4  ;;  %v475_v61 = vperm.slane %v1150_v52, 4  ;;  %v476_v39 = vperm.slane %v1152_v29, 4 }
  0xcf   :  { %v423_v10 = vpop.permute.xlu1 %422  ;;  %v489_v31 = vperm.slane %v1146_v51, 5  ;;  %v490_v19 = vperm.slane %v1148_v26, 5  ;;  %v491_v40 = vperm.slane %v1150_v52, 5  ;;  %v492_v18 = vperm.slane %v1152_v29, 5 }
  0xd0   :  { %v429_v32 = vmul.f32 %v425_v9, %v423_v10  ;;  %v430_v43 = vmul.f32 %v426_v20, %v423_v10  ;;  %v431_v1 = vmul.f32 %v427_v7, %v423_v10  ;;  %v432_v33 = vmul.f32 %v428_v63, %v423_v10 }
  0xd1   :  { %v477_v8 = vmul.f32 %v473_v55, %v471_v46  ;;  %v478_v15 = vmul.f32 %v474_v24, %v471_v46  ;;  %v479_v4 = vmul.f32 %v475_v61, %v471_v46  ;;  %v480_v12 = vmul.f32 %v476_v39, %v471_v46 }
  0xd2   :  { %v433_v60 = vadd.f32 %v429_v32, %v417_v62  ;;  %v434_v23 = vadd.f32 %v430_v43, %v418_v11  ;;  %v435_v49 = vadd.f32 %v431_v1, %v419_v44  ;;  %v436_v50 = vadd.f32 %v432_v33, %v420_v17  ;;  %v519_v33 = vpop.permute.xlu2 %518 }
  0xd3   :  { %v505_v10 = vperm.slane %v1146_v51, 6  ;;  %v506_v6 = vperm.slane %v1148_v26, 6  ;;  %v507_v41 = vperm.slane %v1150_v52, 6  ;;  %v508_v21 = vperm.slane %v1152_v29, 6 }
  0xd4   :  { %v449_v34 = vadd.f32 %v445_v35, %v433_v60  ;;  %v450_v38 = vadd.f32 %v446_v25, %v434_v23  ;;  %v451_v5 = vadd.f32 %v447_v57, %v435_v49  ;;  %v452_v13 = vadd.f32 %v448_v45, %v436_v50 }
  0xd5   :  { %v493_v36 = vmul.f32 %v489_v31, %v487_v27  ;;  %v494_v32 = vmul.f32 %v490_v19, %v487_v27  ;;  %v495_v43 = vmul.f32 %v491_v40, %v487_v27  ;;  %v496_v1 = vmul.f32 %v492_v18, %v487_v27 }
  0xd6   :  { %v521_v23 = vperm.slane %v1146_v51, 7  ;;  %v522_v49 = vperm.slane %v1148_v26, 7  ;;  %v523_v50 = vperm.slane %v1150_v52, 7  ;;  %v524_v35 = vperm.slane %v1152_v29, 7 }
  0xd8   :  { %v455_v37 = vpop.permute.xlu1 %454 }
  0xd9   :  { %v461_v53 = vmul.f32 %v457_v47, %v455_v37  ;;  %v462_v14 = vmul.f32 %v458_v28, %v455_v37  ;;  %v463_v54 = vmul.f32 %v459_v48, %v455_v37  ;;  %v464_v16 = vmul.f32 %v460_v0, %v455_v37 }
  0xda   :  { %v525_v47 = vmul.f32 %v521_v23, %v519_v33  ;;  %v526_v28 = vmul.f32 %v522_v49, %v519_v33  ;;  %v527_v48 = vmul.f32 %v523_v50, %v519_v33  ;;  %v528_v0 = vmul.f32 %v524_v35, %v519_v33  ;;  %v551_v37 = vpop.permute.xlu2 %550 }
  0xdb   :  { %v465_v42 = vadd.f32 %v461_v53, %v449_v34  ;;  %v466_v56 = vadd.f32 %v462_v14, %v450_v38  ;;  %v467_v30 = vadd.f32 %v463_v54, %v451_v5  ;;  %v468_v22 = vadd.f32 %v464_v16, %v452_v13 }
  0xdd   :  { %v481_v9 = vadd.f32 %v477_v8, %v465_v42  ;;  %v482_v20 = vadd.f32 %v478_v15, %v466_v56  ;;  %v483_v7 = vadd.f32 %v479_v4, %v467_v30  ;;  %v484_v63 = vadd.f32 %v480_v12, %v468_v22 }
  0xdf   :  { %v497_v3 = vadd.f32 %v493_v36, %v481_v9  ;;  %v498_v58 = vadd.f32 %v494_v32, %v482_v20  ;;  %v499_v59 = vadd.f32 %v495_v43, %v483_v7  ;;  %v500_v60 = vadd.f32 %v496_v1, %v484_v63  ;;  %v563_v7 = vpop.permute.xlu0 %562 }
  0xe1   :  { %v503_v62 = vpop.permute.xlu1 %502 }
  0xe2   :  { %v509_v11 = vmul.f32 %v505_v10, %v503_v62  ;;  %v510_v44 = vmul.f32 %v506_v6, %v503_v62  ;;  %v511_v17 = vmul.f32 %v507_v41, %v503_v62  ;;  %v512_v2 = vmul.f32 %v508_v21, %v503_v62  ;;  %v595_v19 = vpop.permute.xlu2 %594 }
  0xe4   :  { %v513_v25 = vadd.f32 %v509_v11, %v497_v3  ;;  %v514_v57 = vadd.f32 %v510_v44, %v498_v58  ;;  %v515_v45 = vadd.f32 %v511_v17, %v499_v59  ;;  %v516_v46 = vadd.f32 %v512_v2, %v500_v60 }
  0xe6   :  { %v529_v34 = vadd.f32 %v525_v47, %v513_v25  ;;  %v530_v38 = vadd.f32 %v526_v28, %v514_v57  ;;  %v531_v5 = vadd.f32 %v527_v48, %v515_v45  ;;  %v532_v13 = vadd.f32 %v528_v0, %v516_v46 }
  0xea   :  { %v536_v51 = vpop.permute.xlu1 %535 }
  0xeb   :  { %v538_v53 = vadd.f32 %v536_v51, %v529_v34  ;;  %v539_v26 = vadd.f32 %v536_v51, %v530_v38  ;;  %v540_v14 = vadd.f32 %v536_v51, %v531_v5  ;;  %v541_v52 = vadd.f32 %v536_v51, %v532_v13  ;;  %v627_v38 = vpop.permute.xlu2 %626 }
  0xed   :  { %v1194_v54 = vmax.f32 %v538_v53, 0.0  ;;  %v1196_v29 = vmax.f32 %v539_v26, 0.0  ;;  %v1198_v16 = vmax.f32 %v540_v14, 0.0  ;;  %v1200_v55 = vmax.f32 %v541_v52, 0.0 }
  0xef   :  { %v645_v24 = vperm.slane %v1194_v54, 6  ;;  %v646_v61 = vperm.slane %v1196_v29, 6  ;;  %v647_v39 = vperm.slane %v1198_v16, 6  ;;  %v648_v42 = vperm.slane %v1200_v55, 6 }
  0xf0   :  { %v629_v56 = vperm.slane %v1194_v54, 5  ;;  %v630_v30 = vperm.slane %v1196_v29, 5  ;;  %v631_v22 = vperm.slane %v1198_v16, 5  ;;  %v632_v31 = vperm.slane %v1200_v55, 5 }
  0xf1   :  { %v553_v18 = vperm.slane %v1194_v54, 0  ;;  %v554_v8 = vperm.slane %v1196_v29, 0  ;;  %v555_v15 = vperm.slane %v1198_v16, 0  ;;  %v556_v4 = vperm.slane %v1200_v55, 0 }
  0xf2   :  { %v565_v12 = vperm.slane %v1194_v54, 1  ;;  %v566_v27 = vperm.slane %v1196_v29, 1  ;;  %v567_v9 = vperm.slane %v1198_v16, 1  ;;  %v568_v20 = vperm.slane %v1200_v55, 1 }
  0xf3   :  { %v579_v40 = vpop.permute.xlu1 %578  ;;  %v557_v63 = vmul.f32 %v553_v18, %v551_v37  ;;  %v558_v10 = vmul.f32 %v554_v8, %v551_v37  ;;  %v559_v6 = vmul.f32 %v555_v15, %v551_v37  ;;  %v560_v41 = vmul.f32 %v556_v4, %v551_v37  ;;  %v643_v18 = vpop.permute.xlu0 %642 }
  0xf4   :  { %v569_v21 = vmul.f32 %v565_v12, %v563_v7  ;;  %v570_v36 = vmul.f32 %v566_v27, %v563_v7  ;;  %v571_v32 = vmul.f32 %v567_v9, %v563_v7  ;;  %v572_v43 = vmul.f32 %v568_v20, %v563_v7 }
  0xf5   :  { %v581_v1 = vperm.slane %v1194_v54, 2  ;;  %v582_v33 = vperm.slane %v1196_v29, 2  ;;  %v583_v62 = vperm.slane %v1198_v16, 2  ;;  %v584_v11 = vperm.slane %v1200_v55, 2 }
  0xf6   :  { %v573_v44 = vadd.f32 %v569_v21, %v557_v63  ;;  %v574_v17 = vadd.f32 %v570_v36, %v558_v10  ;;  %v575_v2 = vadd.f32 %v571_v32, %v559_v6  ;;  %v576_v3 = vadd.f32 %v572_v43, %v560_v41 }
  0xf7   :  { %v585_v58 = vmul.f32 %v581_v1, %v579_v40  ;;  %v586_v59 = vmul.f32 %v582_v33, %v579_v40  ;;  %v587_v60 = vmul.f32 %v583_v62, %v579_v40  ;;  %v588_v23 = vmul.f32 %v584_v11, %v579_v40 }
  0xf8   :  { %v597_v49 = vperm.slane %v1194_v54, 3  ;;  %v598_v50 = vperm.slane %v1196_v29, 3  ;;  %v599_v35 = vperm.slane %v1198_v16, 3  ;;  %v600_v25 = vperm.slane %v1200_v55, 3 }
  0xf9   :  { %v589_v57 = vadd.f32 %v585_v58, %v573_v44  ;;  %v590_v45 = vadd.f32 %v586_v59, %v574_v17  ;;  %v591_v46 = vadd.f32 %v587_v60, %v575_v2  ;;  %v592_v47 = vadd.f32 %v588_v23, %v576_v3  ;;  %v676_v58 = vpop.permute.xlu2 %675 }
  0xfa   :  { %v601_v48 = vmul.f32 %v597_v49, %v595_v19  ;;  %v602_v0 = vmul.f32 %v598_v50, %v595_v19  ;;  %v603_v37 = vmul.f32 %v599_v35, %v595_v19  ;;  %v604_v34 = vmul.f32 %v600_v25, %v595_v19 }
  0xfb   :  { %v613_v5 = vperm.slane %v1194_v54, 4  ;;  %v614_v13 = vperm.slane %v1196_v29, 4  ;;  %v615_v51 = vperm.slane %v1198_v16, 4  ;;  %v616_v53 = vperm.slane %v1200_v55, 4 }
  0xfc   :  { %v611_v28 = vpop.permute.xlu1 %610  ;;  %v605_v26 = vadd.f32 %v601_v48, %v589_v57  ;;  %v606_v14 = vadd.f32 %v602_v0, %v590_v45  ;;  %v607_v52 = vadd.f32 %v603_v37, %v591_v46  ;;  %v608_v40 = vadd.f32 %v604_v34, %v592_v47 }
  0xfd   :  { %v617_v8 = vmul.f32 %v613_v5, %v611_v28  ;;  %v618_v15 = vmul.f32 %v614_v13, %v611_v28  ;;  %v619_v4 = vmul.f32 %v615_v51, %v611_v28  ;;  %v620_v12 = vmul.f32 %v616_v53, %v611_v28 }
  0xfe   :  { %v633_v27 = vmul.f32 %v629_v56, %v627_v38  ;;  %v634_v19 = vmul.f32 %v630_v30, %v627_v38  ;;  %v635_v9 = vmul.f32 %v631_v22, %v627_v38  ;;  %v636_v20 = vmul.f32 %v632_v31, %v627_v38 }
  0xff   :  { %v621_v7 = vadd.f32 %v617_v8, %v605_v26  ;;  %v622_v63 = vadd.f32 %v618_v15, %v606_v14  ;;  %v623_v10 = vadd.f32 %v619_v4, %v607_v52  ;;  %v624_v6 = vadd.f32 %v620_v12, %v608_v40 }
 0x100   :  { %v649_v41 = vmul.f32 %v645_v24, %v643_v18  ;;  %v650_v21 = vmul.f32 %v646_v61, %v643_v18  ;;  %v651_v36 = vmul.f32 %v647_v39, %v643_v18  ;;  %v652_v32 = vmul.f32 %v648_v42, %v643_v18 }
 0x101   :  { %v637_v56 = vadd.f32 %v633_v27, %v621_v7  ;;  %v638_v30 = vadd.f32 %v634_v19, %v622_v63  ;;  %v639_v22 = vadd.f32 %v635_v9, %v623_v10  ;;  %v640_v31 = vadd.f32 %v636_v20, %v624_v6 }
 0x102   :  { %v661_v43 = vperm.slane %v1194_v54, 7  ;;  %v662_v1 = vperm.slane %v1196_v29, 7  ;;  %v663_v33 = vperm.slane %v1198_v16, 7  ;;  %v664_v24 = vperm.slane %v1200_v55, 7 }
 0x103   :  { %v653_v61 = vadd.f32 %v649_v41, %v637_v56  ;;  %v654_v11 = vadd.f32 %v650_v21, %v638_v30  ;;  %v655_v44 = vadd.f32 %v651_v36, %v639_v22  ;;  %v656_v39 = vadd.f32 %v652_v32, %v640_v31 }
 0x105   :  { %v659_v62 = vpop.permute.xlu1 %658 }
 0x106   :  { %v665_v17 = vmul.f32 %v661_v43, %v659_v62  ;;  %v666_v2 = vmul.f32 %v662_v1, %v659_v62  ;;  %v667_v42 = vmul.f32 %v663_v33, %v659_v62  ;;  %v668_v3 = vmul.f32 %v664_v24, %v659_v62 }
 0x108   :  { %v669_v59 = vadd.f32 %v665_v17, %v653_v61  ;;  %v670_v60 = vadd.f32 %v666_v2, %v654_v11  ;;  %v671_v23 = vadd.f32 %v667_v42, %v655_v44  ;;  %v672_v54 = vadd.f32 %v668_v3, %v656_v39 }
 0x10a   :  { %v679_v49 = vadd.f32 %v676_v58, %v670_v60  ;;  %v681_v29 = vadd.f32 %v676_v58, %v672_v54  ;;  %v678_v16 = vadd.f32 %v676_v58, %v669_v59  ;;  %v680_v50 = vadd.f32 %v676_v58, %v671_v23 }
 0x10c   :  { %v686_v55 = vrot.slane %v679_v49, 4  ;;  %v687_v35 = vrot.slane %v681_v29, 4 }
 0x10e   :  { %v689_v25 = vsel %vm688_vm0, %v678_v16, %v686_v55  ;;  %v690_v57 = vsel %vm688_vm0, %v680_v50, %v687_v35 }
 0x10f   :  { %693 = vst [vmem:[%s1255_s7] sm:$0xff] %v689_v25 }
 0x110   :  { %694 = vst [vmem:[%s1255_s7 + $0x8] sm:$0xff] %v690_v57 }

</bundles_post_ra>
